<compile_context>
chip_gen: v7x
topology: tpu7x:2x2x1
jax: 0.10.0
libtpu: 0.0.40
codegen_flags: <defaults>
</compile_context>

<pallas_src>
import jax
import jax.numpy as jnp
from jax.experimental import pallas as pl
from jax.experimental.pallas import tpu as pltpu


def _sobel_kernel_roll(pred_ref, gt_ref, out_ref, pad_ref):
    """Lane-aligned fast path (W % 128 == 0).

    pred_ref, gt_ref : (TB, H, W) input tiles (original dtype)
    out_ref          : (TB, H, W) loss tile
    pad_ref          : (TB, H+2, W) f32 row-halo scratch (lane dim stays W)
    """
    TB, H, W = out_ref.shape
    f32 = jnp.float32

    # Sobel conv is linear: sobel(pred) - sobel(gt) = sobel(pred - gt).
    d = pred_ref[...].astype(f32) - gt_ref[...].astype(f32)

    # Row halo: zero top/bottom rows every step (cheap, and keeps the kernel correct when the
    # parallel grid axis is sharded across cores); interior holds d.
    zrow = jnp.zeros((TB, 1, W), f32)
    pad_ref[:, 0:1, :] = zrow
    pad_ref[:, H + 1:H + 2, :] = zrow
    pad_ref[:, 1:H + 1, :] = d

    top = pad_ref[:, 0:H, :]        # top[i] = d[i-1]  (0 at i=0)
    bot = pad_ref[:, 2:H + 2, :]    # bot[i] = d[i+1]  (0 at i=H-1)

    # Separable Sobel: vertical pass first.
    rx = top + 2.0 * d + bot        # -> gx[j] = rx[j-1] - rx[j+1]
    ry = top - bot                  # -> gy[j] = ry[j-1] + 2*ry[j] + ry[j+1]

    # Horizontal +/-1 shifts on the XLU (pltpu.roll) with zero-padding via an iota edge mask.
    col = jax.lax.broadcasted_iota(jnp.int32, (TB, H, W), 2)
    lmask = col == 0
    rmask = col == W - 1
    rx_l = jnp.where(lmask, 0.0, pltpu.roll(rx, 1, axis=2))       # rx[:, :, j-1]
    rx_r = jnp.where(rmask, 0.0, pltpu.roll(rx, W - 1, axis=2))   # rx[:, :, j+1]
    ry_l = jnp.where(lmask, 0.0, pltpu.roll(ry, 1, axis=2))
    ry_r = jnp.where(rmask, 0.0, pltpu.roll(ry, W - 1, axis=2))

    gx = rx_l - rx_r
    gy = ry_l + 2.0 * ry + ry_r

    out_ref[...] = (jnp.abs(gx) + jnp.abs(gy)).astype(out_ref.dtype)


def _sobel_kernel_pad(pred_ref, gt_ref, out_ref, pad_ref):
    """General fallback for small / lane-unaligned widths (e.g. W = 16 smoke test).

    pad_ref : (TB, H+2, W+2) f32 zero-padded difference image (proven-to-lower slicing path).
    """
    TB, H, W = out_ref.shape
    f32 = jnp.float32

    d = pred_ref[...].astype(f32) - gt_ref[...].astype(f32)

    zrow = jnp.zeros((TB, 1, W + 2), f32)
    zcol = jnp.zeros((TB, H, 1), f32)
    pad_ref[:, 0:1, :] = zrow
    pad_ref[:, H + 1:H + 2, :] = zrow
    pad_ref[:, 1:H + 1, 0:1] = zcol
    pad_ref[:, 1:H + 1, W + 1:W + 2] = zcol
    pad_ref[:, 1:H + 1, 1:W + 1] = d

    top = pad_ref[:, 0:H, :]          # (TB, H, W+2)
    mid = pad_ref[:, 1:H + 1, :]      # (TB, H, W+2)
    bot = pad_ref[:, 2:H + 2, :]      # (TB, H, W+2)

    t0, t1, t2 = top[:, :, 0:W], top[:, :, 1:W + 1], top[:, :, 2:W + 2]
    m0, m2 = mid[:, :, 0:W], mid[:, :, 2:W + 2]
    b0, b1, b2 = bot[:, :, 0:W], bot[:, :, 1:W + 1], bot[:, :, 2:W + 2]

    # kernelX = [[1,0,-1],[2,0,-2],[1,0,-1]] ; kernelY = kernelX.T (cross-correlation).
    gx = (t0 - t2) + 2.0 * (m0 - m2) + (b0 - b2)
    gy = (t0 + 2.0 * t1 + t2) - (b0 + 2.0 * b1 + b2)

    out_ref[...] = (jnp.abs(gx) + jnp.abs(gy)).astype(out_ref.dtype)


def _plan_blocks(B, H, W, in_itemsize, out_itemsize, scratch_per_img_bytes):
    """Pick the batch block TB and an explicit scoped-VMEM limit per chip generation."""
    vmem_cap = 128 << 20
    is_v7 = False
    try:
        info = pltpu.get_tpu_info()
        vmem_cap = int(getattr(info, "vmem_capacity_bytes", vmem_cap))
    except Exception:
        pass
    try:
        is_v7 = "v7" in jax.devices()[0].device_kind.lower()
    except Exception:
        pass
    is_v7 = is_v7 or vmem_cap <= (64 << 20)

    # Scoped VMEM we let Mosaic use (defaults are only 16/32 MiB; physical is 64/128 MiB).
    vmem_limit = (48 << 20) if is_v7 else (80 << 20)
    vmem_limit = max(16 << 20, min(vmem_limit, int(vmem_cap * 0.75)))

    # Bytes in flight per image: 2 inputs + 1 output, double-buffered by the pipeline,
    # plus the single-buffered f32 scratch.
    per_img = 2 * H * W * (2 * in_itemsize + out_itemsize) + scratch_per_img_bytes
    budget = int(vmem_limit * 0.7)
    cap = max(1, budget // max(1, per_img))
    if is_v7 and B >= 2:
        cap = min(cap, max(1, B // 2))   # keep >= 2 grid steps so both v7x TCs get work
    cap = min(cap, B)

    tb = 1
    for t in range(1, cap + 1):
        if B % t == 0:
            tb = t

    # TODO(synk): if even a single image over-runs the budget (huge H*W), tile H with a
    # 2-row halo instead of just raising the scoped limit.
    needed = tb * per_img + (4 << 20)
    if needed > vmem_limit:
        vmem_limit = int(min(vmem_cap * 0.9, needed))
    return tb, int(vmem_limit)


def sobel_loss(pred, gt):
    """pred, gt: (N, C, H, W) -> per-pixel loss (N*C, 1, H, W) (matches PyTorch SOBEL)."""
    N, C, H, W = pred.shape
    B = N * C

    # Free (contiguous) reshapes; no extra HBM pad/transpose pass.
    pred_f = pred.reshape(B, H, W)
    gt_f = gt.reshape(B, H, W)

    out_dtype = pred.dtype if jnp.issubdtype(pred.dtype, jnp.floating) else jnp.float32

    use_roll = (W % 128 == 0)                 # lane-aligned fast path
    kernel = _sobel_kernel_roll if use_roll else _sobel_kernel_pad
    scratch_cols = W if use_roll else W + 2
    scratch_per_img = (H + 2) * scratch_cols * 4

    tb, vmem_limit = _plan_blocks(
        B, H, W,
        in_itemsize=jnp.dtype(pred_f.dtype).itemsize,
        out_itemsize=jnp.dtype(out_dtype).itemsize,
        scratch_per_img_bytes=scratch_per_img,
    )

    out = pl.pallas_call(
        kernel,
        out_shape=jax.ShapeDtypeStruct((B, H, W), out_dtype),
        grid_spec=pltpu.PrefetchScalarGridSpec(
            num_scalar_prefetch=0,
            grid=(B // tb,),
            in_specs=[
                pl.BlockSpec((tb, H, W), lambda b: (b, 0, 0)),
                pl.BlockSpec((tb, H, W), lambda b: (b, 0, 0)),
            ],
            out_specs=pl.BlockSpec((tb, H, W), lambda b: (b, 0, 0)),
            scratch_shapes=[pltpu.VMEM((tb, H + 2, scratch_cols), jnp.float32)],
        ),
        compiler_params=pltpu.CompilerParams(
            dimension_semantics=("parallel",),
            vmem_limit_bytes=vmem_limit,
        ),
    )(pred_f, gt_f)

    return out.reshape(B, 1, H, W)


def _sobel_loss_ref(pred, gt):
    """Pure-JAX reference mirroring the PyTorch module (separate convs, then abs-diffs)."""
    N, C, H, W = pred.shape
    B = N * C

    def sobel_xy(img):  # img: (B, H, W) f32
        p = jnp.pad(img, ((0, 0), (1, 1), (1, 1)))
        t0, t1, t2 = p[:, 0:H, 0:W], p[:, 0:H, 1:W + 1], p[:, 0:H, 2:W + 2]
        m0, m2 = p[:, 1:H + 1, 0:W], p[:, 1:H + 1, 2:W + 2]
        b0, b1, b2 = p[:, 2:H + 2, 0:W], p[:, 2:H + 2, 1:W + 1], p[:, 2:H + 2, 2:W + 2]
        gx = (t0 - t2) + 2.0 * (m0 - m2) + (b0 - b2)
        gy = (t0 + 2.0 * t1 + t2) - (b0 + 2.0 * b1 + b2)
        return gx, gy

    px, py = sobel_xy(pred.reshape(B, H, W).astype(jnp.float32))
    gx, gy = sobel_xy(gt.reshape(B, H, W).astype(jnp.float32))
    return (jnp.abs(px - gx) + jnp.abs(py - gy)).reshape(B, 1, H, W)


if __name__ == "__main__":
    key = jax.random.PRNGKey(0)
    k1, k2 = jax.random.split(key)
    N, C, H, W = 2, 4, 16, 16
    pred = jax.random.normal(k1, (N, C, H, W), dtype=jnp.float32)
    gt = jax.random.normal(k2, (N, C, H, W), dtype=jnp.float32)

    loss = sobel_loss(pred, gt)
    jax.block_until_ready(loss)

    assert loss.shape == (N * C, 1, H, W), loss.shape

    ref = _sobel_loss_ref(pred, gt)
    jax.block_until_ready(ref)
    assert jnp.allclose(loss, ref, atol=1e-4, rtol=1e-4), float(jnp.max(jnp.abs(loss - ref)))

    print("KERNEL_OK")
</pallas_src>

<mosaic_0001>
module attributes {stable_mosaic.version = 11 : i64} {
  func.func @_sobel_kernel_pad(%arg0: i32, %arg1: memref<8x16x16xf32, #tpu.memory_space<vmem>>, %arg2: memref<8x16x16xf32, #tpu.memory_space<vmem>>, %arg3: memref<8x16x16xf32, #tpu.memory_space<vmem>>, %arg4: memref<8x18x18xf32, #tpu.memory_space<vmem>>) attributes {dimension_semantics = [#tpu.dimension_semantics<parallel>], iteration_bounds = array<i64: 1>, scalar_prefetch = 0 : i64, scratch_operands = 1 : i64, tpu.core_type = #tpu.core_type<tc>, window_params = [{transform_indices = @transform_0, window_bounds = array<i64: 8, 16, 16>}, {transform_indices = @transform_1, window_bounds = array<i64: 8, 16, 16>}, {transform_indices = @transform_2, window_bounds = array<i64: 8, 16, 16>}]} {
    %c0 = arith.constant 0 : index
    %c0_0 = arith.constant 0 : index
    %c0_1 = arith.constant 0 : index
    %0 = vector.load %arg1[%c0, %c0_0, %c0_1] : memref<8x16x16xf32, #tpu.memory_space<vmem>>, vector<8x16x16xf32>
    %c0_2 = arith.constant 0 : index
    %c0_3 = arith.constant 0 : index
    %c0_4 = arith.constant 0 : index
    %1 = vector.load %arg2[%c0_2, %c0_3, %c0_4] : memref<8x16x16xf32, #tpu.memory_space<vmem>>, vector<8x16x16xf32>
    %2 = arith.subf %0, %1 : vector<8x16x16xf32>
    %cst = arith.constant 0.000000e+00 : f32
    %3 = vector.broadcast %cst : f32 to vector<8x1x18xf32>
    %cst_5 = arith.constant 0.000000e+00 : f32
    %4 = vector.broadcast %cst_5 : f32 to vector<8x16x1xf32>
    %c0_6 = arith.constant 0 : index
    %c0_7 = arith.constant 0 : index
    %c0_8 = arith.constant 0 : index
    %5 = vector.load %arg4[%c0_6, %c0_7, %c0_8] : memref<8x18x18xf32, #tpu.memory_space<vmem>>, vector<8x1x18xf32>
    tpu.vector_store %arg4[%c0_6, %c0_7, %c0_8], %3 {strides = array<i32>} : memref<8x18x18xf32, #tpu.memory_space<vmem>>, vector<8x1x18xf32>,
    %c0_9 = arith.constant 0 : index
    %c17 = arith.constant 17 : index
    %c0_10 = arith.constant 0 : index
    %6 = vector.load %arg4[%c0_9, %c17, %c0_10] : memref<8x18x18xf32, #tpu.memory_space<vmem>>, vector<8x1x18xf32>
    tpu.vector_store %arg4[%c0_9, %c17, %c0_10], %3 {strides = array<i32>} : memref<8x18x18xf32, #tpu.memory_space<vmem>>, vector<8x1x18xf32>,
    %c0_11 = arith.constant 0 : index
    %c1 = arith.constant 1 : index
    %c0_12 = arith.constant 0 : index
    %7 = vector.load %arg4[%c0_11, %c1, %c0_12] : memref<8x18x18xf32, #tpu.memory_space<vmem>>, vector<8x16x1xf32>
    tpu.vector_store %arg4[%c0_11, %c1, %c0_12], %4 {strides = array<i32>} : memref<8x18x18xf32, #tpu.memory_space<vmem>>, vector<8x16x1xf32>,
    %c0_13 = arith.constant 0 : index
    %c1_14 = arith.constant 1 : index
    %c17_15 = arith.constant 17 : index
    %8 = vector.load %arg4[%c0_13, %c1_14, %c17_15] : memref<8x18x18xf32, #tpu.memory_space<vmem>>, vector<8x16x1xf32>
    tpu.vector_store %arg4[%c0_13, %c1_14, %c17_15], %4 {strides = array<i32>} : memref<8x18x18xf32, #tpu.memory_space<vmem>>, vector<8x16x1xf32>,
    %c0_16 = arith.constant 0 : index
    %c1_17 = arith.constant 1 : index
    %c1_18 = arith.constant 1 : index
    %9 = vector.load %arg4[%c0_16, %c1_17, %c1_18] : memref<8x18x18xf32, #tpu.memory_space<vmem>>, vector<8x16x16xf32>
    tpu.vector_store %arg4[%c0_16, %c1_17, %c1_18], %2 {strides = array<i32>} : memref<8x18x18xf32, #tpu.memory_space<vmem>>, vector<8x16x16xf32>,
    %c0_19 = arith.constant 0 : index
    %c0_20 = arith.constant 0 : index
    %c0_21 = arith.constant 0 : index
    %10 = vector.load %arg4[%c0_19, %c0_20, %c0_21] : memref<8x18x18xf32, #tpu.memory_space<vmem>>, vector<8x16x18xf32>
    %c0_22 = arith.constant 0 : index
    %c1_23 = arith.constant 1 : index
    %c0_24 = arith.constant 0 : index
    %11 = vector.load %arg4[%c0_22, %c1_23, %c0_24] : memref<8x18x18xf32, #tpu.memory_space<vmem>>, vector<8x16x18xf32>
    %c0_25 = arith.constant 0 : index
    %c2 = arith.constant 2 : index
    %c0_26 = arith.constant 0 : index
    %12 = vector.load %arg4[%c0_25, %c2, %c0_26] : memref<8x18x18xf32, #tpu.memory_space<vmem>>, vector<8x16x18xf32>
    %13 = vector.extract_strided_slice %10 {offsets = [0, 0, 0], sizes = [8, 16, 16], strides = [1, 1, 1]} : vector<8x16x18xf32> to vector<8x16x16xf32>
    %14 = vector.extract_strided_slice %10 {offsets = [0, 0, 1], sizes = [8, 16, 16], strides = [1, 1, 1]} : vector<8x16x18xf32> to vector<8x16x16xf32>
    %15 = vector.extract_strided_slice %10 {offsets = [0, 0, 2], sizes = [8, 16, 16], strides = [1, 1, 1]} : vector<8x16x18xf32> to vector<8x16x16xf32>
    %16 = vector.extract_strided_slice %11 {offsets = [0, 0, 0], sizes = [8, 16, 16], strides = [1, 1, 1]} : vector<8x16x18xf32> to vector<8x16x16xf32>
    %17 = vector.extract_strided_slice %11 {offsets = [0, 0, 2], sizes = [8, 16, 16], strides = [1, 1, 1]} : vector<8x16x18xf32> to vector<8x16x16xf32>
    %18 = vector.extract_strided_slice %12 {offsets = [0, 0, 0], sizes = [8, 16, 16], strides = [1, 1, 1]} : vector<8x16x18xf32> to vector<8x16x16xf32>
    %19 = vector.extract_strided_slice %12 {offsets = [0, 0, 1], sizes = [8, 16, 16], strides = [1, 1, 1]} : vector<8x16x18xf32> to vector<8x16x16xf32>
    %20 = vector.extract_strided_slice %12 {offsets = [0, 0, 2], sizes = [8, 16, 16], strides = [1, 1, 1]} : vector<8x16x18xf32> to vector<8x16x16xf32>
    %21 = arith.subf %13, %15 : vector<8x16x16xf32>
    %22 = arith.subf %16, %17 : vector<8x16x16xf32>
    %cst_27 = arith.constant 2.000000e+00 : f32
    %23 = vector.broadcast %cst_27 : f32 to vector<8x16x16xf32>
    %24 = arith.mulf %23, %22 : vector<8x16x16xf32>
    %25 = arith.addf %21, %24 : vector<8x16x16xf32>
    %26 = arith.subf %18, %20 : vector<8x16x16xf32>
    %27 = arith.addf %25, %26 : vector<8x16x16xf32>
    %cst_28 = arith.constant 2.000000e+00 : f32
    %28 = vector.broadcast %cst_28 : f32 to vector<8x16x16xf32>
    %29 = arith.mulf %28, %14 : vector<8x16x16xf32>
    %30 = arith.addf %13, %29 : vector<8x16x16xf32>
    %31 = arith.addf %30, %15 : vector<8x16x16xf32>
    %cst_29 = arith.constant 2.000000e+00 : f32
    %32 = vector.broadcast %cst_29 : f32 to vector<8x16x16xf32>
    %33 = arith.mulf %32, %19 : vector<8x16x16xf32>
    %34 = arith.addf %18, %33 : vector<8x16x16xf32>
    %35 = arith.addf %34, %20 : vector<8x16x16xf32>
    %36 = arith.subf %31, %35 : vector<8x16x16xf32>
    %37 = math.absf %27 : vector<8x16x16xf32>
    %38 = math.absf %36 : vector<8x16x16xf32>
    %39 = arith.addf %37, %38 : vector<8x16x16xf32>
    %c0_30 = arith.constant 0 : index
    %c0_31 = arith.constant 0 : index
    %c0_32 = arith.constant 0 : index
    %40 = vector.load %arg3[%c0_30, %c0_31, %c0_32] : memref<8x16x16xf32, #tpu.memory_space<vmem>>, vector<8x16x16xf32>
    tpu.vector_store %arg3[%c0_30, %c0_31, %c0_32], %39 {strides = array<i32>} : memref<8x16x16xf32, #tpu.memory_space<vmem>>, vector<8x16x16xf32>,
    return
  }
  func.func @transform_0(%arg0: i32) -> (i32, i32, i32) {
    %c0_i32 = arith.constant 0 : i32
    %c0_i32_0 = arith.constant 0 : i32
    %c0_i32_1 = arith.constant 0 : i32
    return %arg0, %c0_i32, %c0_i32_0 : i32, i32, i32
  }
  func.func @transform_1(%arg0: i32) -> (i32, i32, i32) {
    %c0_i32 = arith.constant 0 : i32
    %c0_i32_0 = arith.constant 0 : i32
    %c0_i32_1 = arith.constant 0 : i32
    return %arg0, %c0_i32, %c0_i32_0 : i32, i32, i32
  }
  func.func @transform_2(%arg0: i32) -> (i32, i32, i32) {
    %c0_i32 = arith.constant 0 : i32
    %c0_i32_0 = arith.constant 0 : i32
    %c0_i32_1 = arith.constant 0 : i32
    return %arg0, %c0_i32, %c0_i32_0 : i32, i32, i32
  }
}

</mosaic_0001>

<bundles_post_ra>
// kernel: tpu_custom_call.1
= control target key start
LH: loop header
LB: loop body
LE: loop exit
PB: predicated region body
PF: predicated region fallthrough
CT: control target
= control target key end

     0   :  { %7 = vsyncpa [#allocation4], 0  ;;  %s1739_s0 = inlined_call_operand.hbm [shape: f32[8,16,16], index: 0, kind: input, shape index: {}]   ;;  %s1740_s1 = inlined_call_operand.hbm [shape: f32[8,16,16], index: 1, kind: input, shape index: {}]   ;;  %s1741_s2 = inlined_call_operand.hbm [shape: f32[8,16,16], index: 2, kind: output, shape index: {}]  }
   0x1   :  { %8 = vsyncpa [#allocation7], 0 }
   0x2   :  { %9 = vsyncpa [#allocation5], 0  ;;  %s960_s9 = smov [#allocation3]   ;;  %s888_s13 = scalar_lea.hbm %s1739_s0, 2048 }
   0x3   :  { %s15_s10 = sshll.u32 %s960_s9, 4  ;;  %p889_p0 = scmp.ne.s32.totalorder %s1739_s0, %s888_s13  ;;  %s16_s10 = int_to_ptr.vmem [resolvable:$true] %s15_s10 }
   0x4   :  { %p892_p1 = scmp.lt.u32.totalorder %s888_s13, %s1739_s0 }
   0x6   :  { %p894_p2 = pnand %p892_p1, %p889_p0 }
   0x8   :  { %897 = shalt.err (!%p894_p2)
}
   0x9   :  { %s898_s18 = scalar_lea.vmem %s16_s10, 2048  ;;  %p903_p4 = scmp.lt.s32.totalorder %s16_s10, %s16_s10 }
   0xa   :  { %p899_p3 = scmp.ne.s32.totalorder %s16_s10, %s898_s18  ;;  %p904_p5 = scmp.lt.s32.totalorder %s898_s18, %s898_s18 }
   0xc   :  { %p905_p6 = por %p904_p5, %p903_p4 }
   0xe   :  { %p906_p7 = pnand %p905_p6, %p899_p3 }
  0x10   :  { %909 = shalt.err (!%p906_p7)
}
  0x11   :  { %s961_s19 = smov 128   ;;  %s962_s20 = smov 8  }
  0x12   :  { %21 = dma.hbm_to_vmem [thread:$0]  %s1739_s0, 2048, %s16_s10, [#allocation4], %s961_s19, %s961_s19, %s962_s20  }
  0x13   :  { %s963_s23 = smov [#allocation6]   ;;  %s910_s27 = scalar_lea.hbm %s1740_s1, 2048 }
  0x14   :  { %s27_s24 = sshll.u32 %s963_s23, 4  ;;  %p911_p8 = scmp.ne.s32.totalorder %s1740_s1, %s910_s27  ;;  %s28_s24 = int_to_ptr.vmem [resolvable:$true] %s27_s24 }
  0x15   :  { %p914_p9 = scmp.lt.u32.totalorder %s910_s27, %s1740_s1 }
  0x17   :  { %p916_p10 = pnand %p914_p9, %p911_p8 }
  0x19   :  { %919 = shalt.err (!%p916_p10)
}
  0x1a   :  { %s920_s4 = scalar_lea.vmem %s28_s24, 2048  ;;  %p925_p12 = scmp.lt.s32.totalorder %s28_s24, %s28_s24 }
  0x1b   :  { %p921_p11 = scmp.ne.s32.totalorder %s28_s24, %s920_s4  ;;  %p926_p13 = scmp.lt.s32.totalorder %s920_s4, %s920_s4 }
  0x1d   :  { %p927_p0 = por %p926_p13, %p925_p12 }
  0x1f   :  { %p928_p1 = pnand %p927_p0, %p921_p11 }
  0x21   :  { %931 = shalt.err (!%p928_p1)
}
  0x22   :  { %33 = dma.hbm_to_vmem [thread:$0]  %s1740_s1, 2048, %s28_s24, [#allocation7], %s961_s19, %s961_s19, %s962_s20  }
  0x23   :  { %954 = dma.done.wait [#allocation4], 2048  }
  0x24   :  { %955 = vsyncadd [#allocation4], 4294965248 }
  0x25   :  { %956 = dma.done.wait [#allocation7], 2048  }
  0x26   :  { %957 = vsyncadd [#allocation7], 4294965248  ;;  %vm105_vm0 = vcmask 7168   ;;  %vm122_vm1 = vcmask 146568   ;;  %v964_v0 = vmov 0.0   ;;  %vm88_vm2 = vcmask 139264  }
  0x27   :  { %108 = vst.msk [vmem:[#allocation2 + $0x19] sm:$0xff] %vm105_vm0, %v964_v0  ;;  %106 = vst.msk [vmem:[#allocation2 + $0x1] sm:$0xff] %vm105_vm0, %v964_v0  ;;  %v42_v1 = vld [vmem:[#allocation3 + $0x10] sm:$0xff]  ;;  %v40_v3 = vld [vmem:[#allocation3] sm:$0xff]  ;;  %s965_s1 = smov 1   ;;  %vm203_vm3 = vcmask 138248  }
  0x28   :  { %107 = vst.msk [vmem:[#allocation2 + $0x9] sm:$0xff] %vm105_vm0, %v964_v0  ;;  %109 = vst.msk [vmem:[#allocation2 + $0x21] sm:$0xff] %vm105_vm0, %v964_v0  ;;  %v58_v2 = vld [vmem:[#allocation6 + $0x10] sm:$0xff]  ;;  %v56_v5 = vld [vmem:[#allocation6] sm:$0xff]  ;;  %s966_s6 = smov 126   ;;  %s967_s7 = smov 127  }
  0x29   :  { %110 = vst.msk [vmem:[#allocation2 + $0x31] sm:$0xff] %vm105_vm0, %v964_v0  ;;  %111 = vst.msk [vmem:[#allocation2 + $0x39] sm:$0xff] %vm105_vm0, %v964_v0  ;;  %v74_v4 = vsub.f32 %v42_v1, %v58_v2  ;;  %v43_v6 = vld [vmem:[#allocation3 + $0x18] sm:$0xff]  ;;  %v72_v8 = vsub.f32 %v40_v3, %v56_v5  ;;  %v41_v9 = vld [vmem:[#allocation3 + $0x8] sm:$0xff]  ;;  %vm844_vm4 = vcmask 130048   ;;  %s968_s8 = smov [#allocation8]  }
  0x2a   :  { %112 = vst.msk [vmem:[#allocation2 + $0x49] sm:$0xff] %vm105_vm0, %v964_v0  ;;  %113 = vst.msk [vmem:[#allocation2 + $0x51] sm:$0xff] %vm105_vm0, %v964_v0  ;;  %v59_v7 = vld [vmem:[#allocation6 + $0x18] sm:$0xff]  ;;  %v57_v10 = vld [vmem:[#allocation6 + $0x8] sm:$0xff]  ;;  %s866_s9 = sshll.u32 %s968_s8, 4  ;;  %s867_s9 = int_to_ptr.vmem [resolvable:$true] %s866_s9 }
  0x2b   :  { %114 = vst.msk [vmem:[#allocation2 + $0x61] sm:$0xff] %vm105_vm0, %v964_v0  ;;  %115 = vst.msk [vmem:[#allocation2 + $0x69] sm:$0xff] %vm105_vm0, %v964_v0  ;;  %159 = vrot.lane.b32.xlu1 %v74_v4, %s965_s1  ;;  %v75_v11 = vsub.f32 %v43_v6, %v59_v7  ;;  %155 = vrot.lane.b32.xlu0 %v72_v8, %s965_s1  ;;  %v73_v12 = vsub.f32 %v41_v9, %v57_v10  ;;  %v45_v13 = vld [vmem:[#allocation3 + $0x28] sm:$0xff]  ;;  %v44_v15 = vld [vmem:[#allocation3 + $0x20] sm:$0xff]  ;;  %s932_s10 = scalar_lea.vmem %s867_s9, 2048  ;;  %p937_p3 = scmp.lt.s32.totalorder %s867_s9, %s867_s9 }
  0x2c   :  { %116 = vst.msk [vmem:[#allocation2 + $0x79] sm:$0xff] %vm105_vm0, %v964_v0  ;;  %117 = vst.msk [vmem:[#allocation2 + $0x81] sm:$0xff] %vm105_vm0, %v964_v0  ;;  %v61_v14 = vld [vmem:[#allocation6 + $0x28] sm:$0xff]  ;;  %v60_v16 = vld [vmem:[#allocation6 + $0x20] sm:$0xff]  ;;  %p933_p2 = scmp.ne.s32.totalorder %s867_s9, %s932_s10  ;;  %p938_p4 = scmp.lt.s32.totalorder %s932_s10, %s932_s10 }
  0x2d   :  { %118 = vst.msk [vmem:[#allocation2 + $0x91] sm:$0xff] %vm105_vm0, %v964_v0  ;;  %119 = vst.msk [vmem:[#allocation2 + $0x99] sm:$0xff] %vm105_vm0, %v964_v0  ;;  %v77_v17 = vsub.f32 %v45_v13, %v61_v14  ;;  %v76_v18 = vsub.f32 %v44_v15, %v60_v16  ;;  %v47_v19 = vld [vmem:[#allocation3 + $0x38] sm:$0xff]  ;;  %v46_v21 = vld [vmem:[#allocation3 + $0x30] sm:$0xff] }
  0x2e   :  { %120 = vst.msk [vmem:[#allocation2 + $0xa9] sm:$0xff] %vm105_vm0, %v964_v0  ;;  %121 = vst.msk [vmem:[#allocation2 + $0xb1] sm:$0xff] %vm105_vm0, %v964_v0  ;;  %v63_v20 = vld [vmem:[#allocation6 + $0x38] sm:$0xff]  ;;  %v62_v22 = vld [vmem:[#allocation6 + $0x30] sm:$0xff]  ;;  %p939_p5 = por %p938_p4, %p937_p3 }
  0x2f   :  { %125 = vst.msk [vmem:[#allocation2 + $0x19] sm:$0xff] %vm122_vm1, %v964_v0  ;;  %123 = vst.msk [vmem:[#allocation2 + $0x1] sm:$0xff] %vm122_vm1, %v964_v0  ;;  %161 = vrot.lane.b32.xlu1 %v75_v11, %s965_s1  ;;  %157 = vrot.lane.b32.xlu0 %v73_v12, %s965_s1  ;;  %v79_v23 = vsub.f32 %v47_v19, %v63_v20  ;;  %v78_v24 = vsub.f32 %v46_v21, %v62_v22  ;;  %v49_v25 = vld [vmem:[#allocation3 + $0x48] sm:$0xff]  ;;  %v48_v27 = vld [vmem:[#allocation3 + $0x40] sm:$0xff] }
  0x30   :  { %124 = vst.msk [vmem:[#allocation2 + $0x9] sm:$0xff] %vm122_vm1, %v964_v0  ;;  %126 = vst.msk [vmem:[#allocation2 + $0x21] sm:$0xff] %vm122_vm1, %v964_v0  ;;  %v65_v26 = vld [vmem:[#allocation6 + $0x48] sm:$0xff]  ;;  %v64_v28 = vld [vmem:[#allocation6 + $0x40] sm:$0xff]  ;;  %p940_p6 = pnand %p939_p5, %p933_p2 }
  0x31   :  { %127 = vst.msk [vmem:[#allocation2 + $0x31] sm:$0xff] %vm122_vm1, %v964_v0  ;;  %128 = vst.msk [vmem:[#allocation2 + $0x39] sm:$0xff] %vm122_vm1, %v964_v0  ;;  %v81_v29 = vsub.f32 %v49_v25, %v65_v26  ;;  %v80_v30 = vsub.f32 %v48_v27, %v64_v28  ;;  %v51_v31 = vld [vmem:[#allocation3 + $0x58] sm:$0xff]  ;;  %v50_v33 = vld [vmem:[#allocation3 + $0x50] sm:$0xff] }
  0x32   :  { %129 = vst.msk [vmem:[#allocation2 + $0x49] sm:$0xff] %vm122_vm1, %v964_v0  ;;  %130 = vst.msk [vmem:[#allocation2 + $0x51] sm:$0xff] %vm122_vm1, %v964_v0  ;;  %v67_v32 = vld [vmem:[#allocation6 + $0x58] sm:$0xff]  ;;  %v66_v34 = vld [vmem:[#allocation6 + $0x50] sm:$0xff] }
  0x33   :  { %131 = vst.msk [vmem:[#allocation2 + $0x61] sm:$0xff] %vm122_vm1, %v964_v0  ;;  %132 = vst.msk [vmem:[#allocation2 + $0x69] sm:$0xff] %vm122_vm1, %v964_v0  ;;  %165 = vrot.lane.b32.xlu1 %v77_v17, %s965_s1  ;;  %163 = vrot.lane.b32.xlu0 %v76_v18, %s965_s1  ;;  %v83_v35 = vsub.f32 %v51_v31, %v67_v32  ;;  %v82_v36 = vsub.f32 %v50_v33, %v66_v34  ;;  %v53_v37 = vld [vmem:[#allocation3 + $0x68] sm:$0xff]  ;;  %v52_v39 = vld [vmem:[#allocation3 + $0x60] sm:$0xff] }
  0x34   :  { %133 = vst.msk [vmem:[#allocation2 + $0x79] sm:$0xff] %vm122_vm1, %v964_v0  ;;  %134 = vst.msk [vmem:[#allocation2 + $0x81] sm:$0xff] %vm122_vm1, %v964_v0  ;;  %v69_v38 = vld [vmem:[#allocation6 + $0x68] sm:$0xff]  ;;  %v68_v40 = vld [vmem:[#allocation6 + $0x60] sm:$0xff] }
  0x35   :  { %135 = vst.msk [vmem:[#allocation2 + $0x91] sm:$0xff] %vm122_vm1, %v964_v0  ;;  %136 = vst.msk [vmem:[#allocation2 + $0x99] sm:$0xff] %vm122_vm1, %v964_v0  ;;  %v85_v41 = vsub.f32 %v53_v37, %v69_v38  ;;  %v84_v42 = vsub.f32 %v52_v39, %v68_v40  ;;  %v55_v43 = vld [vmem:[#allocation3 + $0x78] sm:$0xff]  ;;  %v54_v45 = vld [vmem:[#allocation3 + $0x70] sm:$0xff] }
  0x36   :  { %137 = vst.msk [vmem:[#allocation2 + $0xa9] sm:$0xff] %vm122_vm1, %v964_v0  ;;  %138 = vst.msk [vmem:[#allocation2 + $0xb1] sm:$0xff] %vm122_vm1, %v964_v0  ;;  %v71_v44 = vld [vmem:[#allocation6 + $0x78] sm:$0xff]  ;;  %v70_v46 = vld [vmem:[#allocation6 + $0x70] sm:$0xff] }
  0x37   :  { %89 = vst.msk [vmem:[#allocation2] sm:$0x1] %vm88_vm2, %v964_v0  ;;  %90 = vst.msk [vmem:[#allocation2 + $0x18] sm:$0x1] %vm88_vm2, %v964_v0  ;;  %169 = vrot.lane.b32.xlu1 %v79_v23, %s965_s1  ;;  %167 = vrot.lane.b32.xlu0 %v78_v24, %s965_s1  ;;  %v87_v47 = vsub.f32 %v55_v43, %v71_v44  ;;  %v86_v48 = vsub.f32 %v54_v45, %v70_v46 }
  0x38   :  { %91 = vst.msk [vmem:[#allocation2 + $0x30] sm:$0x1] %vm88_vm2, %v964_v0  ;;  %92 = vst.msk [vmem:[#allocation2 + $0x48] sm:$0x1] %vm88_vm2, %v964_v0 }
  0x39   :  { %93 = vst.msk [vmem:[#allocation2 + $0x60] sm:$0x1] %vm88_vm2, %v964_v0  ;;  %94 = vst.msk [vmem:[#allocation2 + $0x78] sm:$0x1] %vm88_vm2, %v964_v0 }
  0x3a   :  { %95 = vst.msk [vmem:[#allocation2 + $0x90] sm:$0x1] %vm88_vm2, %v964_v0  ;;  %96 = vst.msk [vmem:[#allocation2 + $0xa8] sm:$0x1] %vm88_vm2, %v964_v0 }
  0x3b   :  { %97 = vst.msk [vmem:[#allocation2 + $0x11] sm:$0x1] %vm88_vm2, %v964_v0  ;;  %98 = vst.msk [vmem:[#allocation2 + $0x29] sm:$0x1] %vm88_vm2, %v964_v0  ;;  %173 = vrot.lane.b32.xlu1 %v81_v29, %s965_s1  ;;  %171 = vrot.lane.b32.xlu0 %v80_v30, %s965_s1 }
  0x3c   :  { %99 = vst.msk [vmem:[#allocation2 + $0x41] sm:$0x1] %vm88_vm2, %v964_v0  ;;  %100 = vst.msk [vmem:[#allocation2 + $0x59] sm:$0x1] %vm88_vm2, %v964_v0 }
  0x3d   :  { %101 = vst.msk [vmem:[#allocation2 + $0x71] sm:$0x1] %vm88_vm2, %v964_v0  ;;  %102 = vst.msk [vmem:[#allocation2 + $0x89] sm:$0x1] %vm88_vm2, %v964_v0 }
  0x3e   :  { %103 = vst.msk [vmem:[#allocation2 + $0xa1] sm:$0x1] %vm88_vm2, %v964_v0  ;;  %104 = vst.msk [vmem:[#allocation2 + $0xb9] sm:$0x1] %vm88_vm2, %v964_v0 }
  0x3f   :  { %177 = vrot.lane.b32.xlu1 %v83_v35, %s965_s1  ;;  %175 = vrot.lane.b32.xlu0 %v82_v36, %s965_s1 }
  0x43   :  { %181 = vrot.lane.b32.xlu1 %v85_v41, %s965_s1  ;;  %179 = vrot.lane.b32.xlu0 %v84_v42, %s965_s1 }
  0x47   :  { %185 = vrot.lane.b32.xlu1 %v87_v47, %s965_s1  ;;  %183 = vrot.lane.b32.xlu0 %v86_v48, %s965_s1 }
  0x9d   :  { %v160_v49 = vpop.permute.xlu1 %159  ;;  %v156_v50 = vpop.permute.xlu0 %155 }
  0x9e   :  { %206 = vst.msk [vmem:[#allocation2 + $0x19] sm:$0xff] %vm203_vm3, %v160_v49  ;;  %204 = vst.msk [vmem:[#allocation2 + $0x1] sm:$0xff] %vm203_vm3, %v156_v50 }
  0xa1   :  { %v162_v51 = vpop.permute.xlu1 %161  ;;  %v158_v52 = vpop.permute.xlu0 %157 }
  0xa2   :  { %207 = vst.msk [vmem:[#allocation2 + $0x21] sm:$0xff] %vm203_vm3, %v162_v51  ;;  %205 = vst.msk [vmem:[#allocation2 + $0x9] sm:$0xff] %vm203_vm3, %v158_v52 }
  0xa5   :  { %v166_v53 = vpop.permute.xlu1 %165  ;;  %v164_v54 = vpop.permute.xlu0 %163  ;;  %v1082_v55 = vld [vmem:[#allocation2] sm:$0xff]  ;;  %v1088_v56 = vld [vmem:[#allocation2 + $0x18] sm:$0xff] }
  0xa6   :  { %209 = vst.msk [vmem:[#allocation2 + $0x39] sm:$0xff] %vm203_vm3, %v166_v53  ;;  %208 = vst.msk [vmem:[#allocation2 + $0x31] sm:$0xff] %vm203_vm3, %v164_v54  ;;  %284 = vrot.lane.b32.xlu0 %v1082_v55, %s966_s6  ;;  %v1156_v17 = vld [vmem:[#allocation2 + $0x1] sm:$0xff]  ;;  %v1164_v19 = vld [vmem:[#allocation2 + $0x19] sm:$0xff]  ;;  %v556_v46 = vmul.f32 2.0, %v1082_v55  ;;  %v558_v49 = vmul.f32 2.0, %v1088_v56 }
  0xa9   :  { %v170_v57 = vpop.permute.xlu1 %169  ;;  %v168_v58 = vpop.permute.xlu0 %167  ;;  %v1090_v59 = vld [vmem:[#allocation2 + $0x8] sm:$0xff]  ;;  %v1098_v62 = vld [vmem:[#allocation2 + $0x20] sm:$0xff] }
  0xaa   :  { %211 = vst.msk [vmem:[#allocation2 + $0x51] sm:$0xff] %vm203_vm3, %v170_v57  ;;  %210 = vst.msk [vmem:[#allocation2 + $0x49] sm:$0xff] %vm203_vm3, %v168_v58  ;;  %288 = vrot.lane.b32.xlu0 %v1088_v56, %s966_s6  ;;  %286 = vrot.lane.b32.xlu1 %v1090_v59, %s966_s6  ;;  %v1162_v18 = vld [vmem:[#allocation2 + $0x9] sm:$0xff]  ;;  %v1170_v20 = vld [vmem:[#allocation2 + $0x21] sm:$0xff]  ;;  %v557_v48 = vmul.f32 2.0, %v1090_v59  ;;  %v559_v50 = vmul.f32 2.0, %v1098_v62 }
  0xab   :  { %v1220_v33 = vld [vmem:[#allocation2 + $0x2] sm:$0xff]  ;;  %v1226_v34 = vld [vmem:[#allocation2 + $0xa] sm:$0xff]  ;;  %v1228_v35 = vld [vmem:[#allocation2 + $0x1a] sm:$0xff] }
  0xac   :  { %1825 = vst [vmem:[#allocation22_spill] sm:$0xff] %v1220_v33  ;;  %1826 = vst [vmem:[#allocation23_spill] sm:$0xff] %v1226_v34  ;;  %v1234_v36 = vld [vmem:[#allocation2 + $0x22] sm:$0xff] }
  0xad   :  { %v174_v60 = vpop.permute.xlu1 %173  ;;  %v172_v61 = vpop.permute.xlu0 %171  ;;  %v1100_v63 = vld [vmem:[#allocation2 + $0x30] sm:$0xff]  ;;  %v1108_v0 = vld [vmem:[#allocation2 + $0x38] sm:$0xff]  ;;  %1827 = vst [vmem:[#allocation24_spill] sm:$0xff] %v1228_v35  ;;  %1828 = vst [vmem:[#allocation25_spill] sm:$0xff] %v1234_v36 }
  0xae   :  { %213 = vst.msk [vmem:[#allocation2 + $0x69] sm:$0xff] %vm203_vm3, %v174_v60  ;;  %212 = vst.msk [vmem:[#allocation2 + $0x61] sm:$0xff] %vm203_vm3, %v172_v61  ;;  %290 = vrot.lane.b32.xlu1 %v1098_v62, %s966_s6  ;;  %292 = vrot.lane.b32.xlu0 %v1100_v63, %s966_s6  ;;  %v1172_v21 = vld [vmem:[#allocation2 + $0x31] sm:$0xff]  ;;  %v1178_v22 = vld [vmem:[#allocation2 + $0x39] sm:$0xff]  ;;  %v560_v51 = vmul.f32 2.0, %v1100_v63  ;;  %v561_v52 = vmul.f32 2.0, %v1108_v0 }
  0xaf   :  { %v1236_v37 = vld [vmem:[#allocation2 + $0x32] sm:$0xff]  ;;  %v1242_v38 = vld [vmem:[#allocation2 + $0x3a] sm:$0xff] }
  0xb0   :  { %1829 = vst [vmem:[#allocation26_spill] sm:$0xff] %v1236_v37  ;;  %1830 = vst [vmem:[#allocation27_spill] sm:$0xff] %v1242_v38 }
  0xb1   :  { %v178_v1 = vpop.permute.xlu1 %177  ;;  %v176_v2 = vpop.permute.xlu0 %175  ;;  %v1110_v3 = vld [vmem:[#allocation2 + $0x48] sm:$0xff]  ;;  %v1118_v4 = vld [vmem:[#allocation2 + $0x50] sm:$0xff] }
  0xb2   :  { %215 = vst.msk [vmem:[#allocation2 + $0x81] sm:$0xff] %vm203_vm3, %v178_v1  ;;  %214 = vst.msk [vmem:[#allocation2 + $0x79] sm:$0xff] %vm203_vm3, %v176_v2  ;;  %294 = vrot.lane.b32.xlu1 %v1108_v0, %s966_s6  ;;  %296 = vrot.lane.b32.xlu0 %v1110_v3, %s966_s6  ;;  %v1180_v23 = vld [vmem:[#allocation2 + $0x49] sm:$0xff]  ;;  %v1186_v24 = vld [vmem:[#allocation2 + $0x51] sm:$0xff]  ;;  %v562_v53 = vmul.f32 2.0, %v1110_v3  ;;  %v563_v54 = vmul.f32 2.0, %v1118_v4 }
  0xb3   :  { %v1244_v39 = vld [vmem:[#allocation2 + $0x4a] sm:$0xff]  ;;  %v1250_v40 = vld [vmem:[#allocation2 + $0x52] sm:$0xff] }
  0xb4   :  { %1831 = vst [vmem:[#allocation28_spill] sm:$0xff] %v1244_v39  ;;  %1832 = vst [vmem:[#allocation29_spill] sm:$0xff] %v1250_v40 }
  0xb5   :  { %v182_v5 = vpop.permute.xlu1 %181  ;;  %v180_v6 = vpop.permute.xlu0 %179  ;;  %v1120_v7 = vld [vmem:[#allocation2 + $0x60] sm:$0xff]  ;;  %v1128_v8 = vld [vmem:[#allocation2 + $0x68] sm:$0xff] }
  0xb6   :  { %217 = vst.msk [vmem:[#allocation2 + $0x99] sm:$0xff] %vm203_vm3, %v182_v5  ;;  %216 = vst.msk [vmem:[#allocation2 + $0x91] sm:$0xff] %vm203_vm3, %v180_v6  ;;  %298 = vrot.lane.b32.xlu1 %v1118_v4, %s966_s6  ;;  %300 = vrot.lane.b32.xlu0 %v1120_v7, %s966_s6  ;;  %v1188_v25 = vld [vmem:[#allocation2 + $0x61] sm:$0xff]  ;;  %v1194_v26 = vld [vmem:[#allocation2 + $0x69] sm:$0xff]  ;;  %v564_v57 = vmul.f32 2.0, %v1120_v7  ;;  %v565_v58 = vmul.f32 2.0, %v1128_v8 }
  0xb7   :  { %v1252_v41 = vld [vmem:[#allocation2 + $0x62] sm:$0xff]  ;;  %v1258_v42 = vld [vmem:[#allocation2 + $0x6a] sm:$0xff] }
  0xb8   :  { %1833 = vst [vmem:[#allocation30_spill] sm:$0xff] %v1252_v41  ;;  %1834 = vst [vmem:[#allocation31_spill] sm:$0xff] %v1258_v42 }
  0xb9   :  { %v186_v9 = vpop.permute.xlu1 %185  ;;  %v184_v10 = vpop.permute.xlu0 %183  ;;  %v1130_v11 = vld [vmem:[#allocation2 + $0x78] sm:$0xff]  ;;  %v1138_v12 = vld [vmem:[#allocation2 + $0x80] sm:$0xff] }
  0xba   :  { %1815 = vst [vmem:[#allocation12_spill] sm:$0xff] %v1130_v11  ;;  %219 = vst.msk [vmem:[#allocation2 + $0xb1] sm:$0xff] %vm203_vm3, %v186_v9  ;;  %302 = vrot.lane.b32.xlu1 %v1128_v8, %s966_s6  ;;  %304 = vrot.lane.b32.xlu0 %v1130_v11, %s966_s6  ;;  %v1196_v27 = vld [vmem:[#allocation2 + $0x79] sm:$0xff]  ;;  %v1202_v28 = vld [vmem:[#allocation2 + $0x81] sm:$0xff]  ;;  %v566_v60 = vmul.f32 2.0, %v1130_v11  ;;  %v567_v1 = vmul.f32 2.0, %v1138_v12 }
  0xbb   :  { %218 = vst.msk [vmem:[#allocation2 + $0xa9] sm:$0xff] %vm203_vm3, %v184_v10  ;;  %1816 = vst [vmem:[#allocation13_spill] sm:$0xff] %v1138_v12  ;;  %v1260_v43 = vld [vmem:[#allocation2 + $0x7a] sm:$0xff]  ;;  %v1266_v44 = vld [vmem:[#allocation2 + $0x82] sm:$0xff] }
  0xbc   :  { %1835 = vst [vmem:[#allocation32_spill] sm:$0xff] %v1260_v43  ;;  %1836 = vst [vmem:[#allocation33_spill] sm:$0xff] %v1266_v44 }
  0xbd   :  { %v1140_v13 = vld [vmem:[#allocation2 + $0x90] sm:$0xff]  ;;  %v1146_v14 = vld [vmem:[#allocation2 + $0x98] sm:$0xff] }
  0xbe   :  { %1817 = vst [vmem:[#allocation14_spill] sm:$0xff] %v1140_v13  ;;  %306 = vrot.lane.b32.xlu1 %v1138_v12, %s966_s6  ;;  %308 = vrot.lane.b32.xlu0 %v1140_v13, %s966_s6  ;;  %1818 = vst [vmem:[#allocation15_spill] sm:$0xff] %v1146_v14  ;;  %v1204_v29 = vld [vmem:[#allocation2 + $0x91] sm:$0xff]  ;;  %v1210_v30 = vld [vmem:[#allocation2 + $0x99] sm:$0xff]  ;;  %v568_v2 = vmul.f32 2.0, %v1140_v13  ;;  %v569_v9 = vmul.f32 2.0, %v1146_v14 }
  0xbf   :  { %1821 = vst [vmem:[#allocation18_spill] sm:$0xff] %v1204_v29  ;;  %1822 = vst [vmem:[#allocation19_spill] sm:$0xff] %v1210_v30  ;;  %v1268_v45 = vld [vmem:[#allocation2 + $0x92] sm:$0xff]  ;;  %v1275_v47 = vld [vmem:[#allocation2 + $0x9a] sm:$0xff] }
  0xc0   :  { %1837 = vst [vmem:[#allocation34_spill] sm:$0xff] %v1268_v45  ;;  %1838 = vst [vmem:[#allocation35_spill] sm:$0xff] %v1275_v47 }
  0xc1   :  { %v1218_v32 = vld [vmem:[#allocation2 + $0xb1] sm:$0xff] }
  0xc2   :  { %v1148_v15 = vld [vmem:[#allocation2 + $0xa8] sm:$0xff]  ;;  %310 = vrot.lane.b32.xlu1 %v1146_v14, %s966_s6  ;;  %v1154_v16 = vld [vmem:[#allocation2 + $0xb0] sm:$0xff]  ;;  %1824 = vst [vmem:[#allocation21_spill] sm:$0xff] %v1218_v32 }
  0xc3   :  { %1819 = vst [vmem:[#allocation16_spill] sm:$0xff] %v1148_v15  ;;  %312 = vrot.lane.b32.xlu0 %v1148_v15, %s966_s6  ;;  %1820 = vst [vmem:[#allocation17_spill] sm:$0xff] %v1154_v16  ;;  %v1212_v31 = vld [vmem:[#allocation2 + $0xa9] sm:$0xff]  ;;  %v570_v10 = vmul.f32 2.0, %v1148_v15 }
  0xc4   :  { %1823 = vst [vmem:[#allocation20_spill] sm:$0xff] %v1212_v31 }
  0xc6   :  { %314 = vrot.lane.b32.xlu1 %v1154_v16, %s966_s6 }
  0xc7   :  { %364 = vrot.lane.b32.xlu0 %v1156_v17, %s966_s6 }
  0xca   :  { %366 = vrot.lane.b32.xlu1 %v1162_v18, %s966_s6 }
  0xcb   :  { %368 = vrot.lane.b32.xlu0 %v1164_v19, %s966_s6 }
  0xce   :  { %370 = vrot.lane.b32.xlu1 %v1170_v20, %s966_s6 }
  0xcf   :  { %372 = vrot.lane.b32.xlu0 %v1172_v21, %s966_s6 }
  0xd2   :  { %374 = vrot.lane.b32.xlu1 %v1178_v22, %s966_s6 }
  0xd3   :  { %376 = vrot.lane.b32.xlu0 %v1180_v23, %s966_s6 }
  0xd6   :  { %378 = vrot.lane.b32.xlu1 %v1186_v24, %s966_s6 }
  0xd7   :  { %380 = vrot.lane.b32.xlu0 %v1188_v25, %s966_s6 }
  0xda   :  { %382 = vrot.lane.b32.xlu1 %v1194_v26, %s966_s6 }
  0xdb   :  { %384 = vrot.lane.b32.xlu0 %v1196_v27, %s966_s6 }
  0xde   :  { %386 = vrot.lane.b32.xlu1 %v1202_v28, %s966_s6 }
  0xdf   :  { %388 = vrot.lane.b32.xlu0 %v1204_v29, %s966_s6 }
  0xe2   :  { %390 = vrot.lane.b32.xlu1 %v1210_v30, %s966_s6 }
  0xe3   :  { %392 = vrot.lane.b32.xlu0 %v1212_v31, %s966_s6 }
  0xe6   :  { %394 = vrot.lane.b32.xlu1 %v1218_v32, %s966_s6 }
  0xe7   :  { %476 = vrot.lane.b32.xlu0 %v1220_v33, %s966_s6 }
  0xea   :  { %478 = vrot.lane.b32.xlu1 %v1226_v34, %s966_s6 }
  0xeb   :  { %480 = vrot.lane.b32.xlu0 %v1228_v35, %s966_s6 }
  0xee   :  { %482 = vrot.lane.b32.xlu1 %v1234_v36, %s966_s6 }
  0xef   :  { %484 = vrot.lane.b32.xlu0 %v1236_v37, %s966_s6 }
  0xf2   :  { %486 = vrot.lane.b32.xlu1 %v1242_v38, %s966_s6 }
  0xf3   :  { %488 = vrot.lane.b32.xlu0 %v1244_v39, %s966_s6 }
  0xf6   :  { %490 = vrot.lane.b32.xlu1 %v1250_v40, %s966_s6 }
  0xf7   :  { %492 = vrot.lane.b32.xlu0 %v1252_v41, %s966_s6 }
  0xfa   :  { %494 = vrot.lane.b32.xlu1 %v1258_v42, %s966_s6 }
  0xfb   :  { %496 = vrot.lane.b32.xlu0 %v1260_v43, %s966_s6 }
  0xfe   :  { %498 = vrot.lane.b32.xlu1 %v1266_v44, %s966_s6 }
  0xff   :  { %500 = vrot.lane.b32.xlu0 %v1268_v45, %s966_s6 }
 0x102   :  { %502 = vrot.lane.b32.xlu1 %v1275_v47, %s966_s6 }
 0x103   :  { %588 = vrot.lane.b32.xlu0 %v556_v46, %s967_s7 }
 0x106   :  { %590 = vrot.lane.b32.xlu1 %v557_v48, %s967_s7 }
 0x107   :  { %592 = vrot.lane.b32.xlu0 %v558_v49, %s967_s7  ;;  %v571_v49 = vmul.f32 2.0, %v1154_v16 }
 0x10a   :  { %594 = vrot.lane.b32.xlu1 %v559_v50, %s967_s7  ;;  %v668_v50 = vmul.f32 2.0, %v1220_v33 }
 0x10b   :  { %596 = vrot.lane.b32.xlu0 %v560_v51, %s967_s7 }
 0x10e   :  { %598 = vrot.lane.b32.xlu1 %v561_v52, %s967_s7 }
 0x10f   :  { %600 = vrot.lane.b32.xlu0 %v562_v53, %s967_s7  ;;  %v669_v53 = vmul.f32 2.0, %v1226_v34 }
 0x112   :  { %602 = vrot.lane.b32.xlu1 %v563_v54, %s967_s7  ;;  %v670_v54 = vmul.f32 2.0, %v1228_v35 }
 0x113   :  { %604 = vrot.lane.b32.xlu0 %v564_v57, %s967_s7 }
 0x116   :  { %606 = vrot.lane.b32.xlu1 %v565_v58, %s967_s7 }
 0x117   :  { %608 = vrot.lane.b32.xlu0 %v566_v60, %s967_s7  ;;  %v671_v60 = vmul.f32 2.0, %v1234_v36 }
 0x118   :  { %v1300_v61 = vpop.permute.xlu0 %284 }
 0x11a   :  { %610 = vrot.lane.b32.xlu1 %v567_v1, %s967_s7  ;;  %v672_v1 = vmul.f32 2.0, %v1236_v37 }
 0x11b   :  { %612 = vrot.lane.b32.xlu0 %v568_v2, %s967_s7 }
 0x11c   :  { %v1306_v5 = vpop.permute.xlu1 %286  ;;  %v1308_v6 = vpop.permute.xlu0 %288 }
 0x11d   :  { %1839 = vst [vmem:[#allocation36_spill] sm:$0xff] %v1308_v6 }
 0x11e   :  { %614 = vrot.lane.b32.xlu1 %v569_v9, %s967_s7 }
 0x11f   :  { %616 = vrot.lane.b32.xlu0 %v570_v10, %s967_s7  ;;  %v673_v10 = vmul.f32 2.0, %v1242_v38 }
 0x120   :  { %v1314_v46 = vpop.permute.xlu1 %290  ;;  %v1316_v48 = vpop.permute.xlu0 %292 }
 0x121   :  { %1840 = vst [vmem:[#allocation37_spill] sm:$0xff] %v1314_v46 }
 0x122   :  { %618 = vrot.lane.b32.xlu1 %v571_v49, %s967_s7  ;;  %v674_v49 = vmul.f32 2.0, %v1244_v39 }
 0x123   :  { %700 = vrot.lane.b32.xlu0 %v668_v50, %s967_s7 }
 0x124   :  { %v1322_v51 = vpop.permute.xlu1 %294  ;;  %v1324_v52 = vpop.permute.xlu0 %296 }
 0x125   :  { %1841 = vst [vmem:[#allocation38_spill] sm:$0xff] %v1322_v51  ;;  %1842 = vst [vmem:[#allocation39_spill] sm:$0xff] %v1324_v52 }
 0x126   :  { %702 = vrot.lane.b32.xlu1 %v669_v53, %s967_s7 }
 0x127   :  { %704 = vrot.lane.b32.xlu0 %v670_v54, %s967_s7  ;;  %v675_v54 = vmul.f32 2.0, %v1250_v40 }
 0x128   :  { %v1330_v57 = vpop.permute.xlu1 %298  ;;  %v1332_v58 = vpop.permute.xlu0 %300 }
 0x129   :  { %1843 = vst [vmem:[#allocation40_spill] sm:$0xff] %v1332_v58 }
 0x12a   :  { %706 = vrot.lane.b32.xlu1 %v671_v60, %s967_s7  ;;  %v676_v60 = vmul.f32 2.0, %v1252_v41  ;;  %v1368_v41 = vld [vmem:[#allocation2 + $0xaa] sm:$0xff] }
 0x12b   :  { %708 = vrot.lane.b32.xlu0 %v672_v1, %s967_s7  ;;  %1851 = vst [vmem:[#allocation48_spill] sm:$0xff] %v1368_v41 }
 0x12c   :  { %v1338_v2 = vpop.permute.xlu1 %302  ;;  %v1340_v9 = vpop.permute.xlu0 %304 }
 0x12d   :  { %1844 = vst [vmem:[#allocation41_spill] sm:$0xff] %v1338_v2  ;;  %1845 = vst [vmem:[#allocation42_spill] sm:$0xff] %v1340_v9 }
 0x12e   :  { %710 = vrot.lane.b32.xlu1 %v673_v10, %s967_s7  ;;  %v677_v10 = vmul.f32 2.0, %v1258_v42 }
 0x12f   :  { %712 = vrot.lane.b32.xlu0 %v674_v49, %s967_s7  ;;  %v678_v49 = vmul.f32 2.0, %v1260_v43 }
 0x130   :  { %v1346_v50 = vpop.permute.xlu1 %306  ;;  %v1348_v53 = vpop.permute.xlu0 %308 }
 0x131   :  { %1846 = vst [vmem:[#allocation43_spill] sm:$0xff] %v1346_v50  ;;  %1847 = vst [vmem:[#allocation44_spill] sm:$0xff] %v1348_v53 }
 0x132   :  { %714 = vrot.lane.b32.xlu1 %v675_v54, %s967_s7  ;;  %v679_v54 = vmul.f32 2.0, %v1266_v44 }
 0x133   :  { %716 = vrot.lane.b32.xlu0 %v676_v60, %s967_s7  ;;  %v680_v60 = vmul.f32 2.0, %v1268_v45 }
 0x134   :  { %v1354_v1 = vpop.permute.xlu1 %310 }
 0x135   :  { %1848 = vst [vmem:[#allocation45_spill] sm:$0xff] %v1354_v1  ;;  %v1356_v16 = vpop.permute.xlu0 %312 }
 0x136   :  { %1849 = vst [vmem:[#allocation46_spill] sm:$0xff] %v1356_v16  ;;  %718 = vrot.lane.b32.xlu1 %v677_v10, %s967_s7  ;;  %v681_v10 = vmul.f32 2.0, %v1275_v47  ;;  %v1887_v16 = vld [vmem:[#allocation22_spill] sm:$0xff] }
 0x137   :  { %720 = vrot.lane.b32.xlu0 %v678_v49, %s967_s7  ;;  %v682_v49 = vmul.f32 2.0, %v1368_v41 }
 0x138   :  { %v1362_v32 = vpop.permute.xlu1 %314 }
 0x139   :  { %1850 = vst [vmem:[#allocation47_spill] sm:$0xff] %v1362_v32  ;;  %v1364_v40 = vpop.permute.xlu0 %364  ;;  %v1378_v32 = vld [vmem:[#allocation2 + $0xb2] sm:$0xff] }
 0x13a   :  { %722 = vrot.lane.b32.xlu1 %v679_v54, %s967_s7  ;;  %1852 = vst [vmem:[#allocation49_spill] sm:$0xff] %v1378_v32  ;;  %v683_v54 = vmul.f32 2.0, %v1378_v32 }
 0x13b   :  { %724 = vrot.lane.b32.xlu0 %v680_v60, %s967_s7 }
 0x13c   :  { %v1372_v42 = vpop.permute.xlu1 %366 }
 0x13d   :  { %v1374_v43 = vpop.permute.xlu0 %368 }
 0x13e   :  { %726 = vrot.lane.b32.xlu1 %v681_v10, %s967_s7 }
 0x13f   :  { %728 = vrot.lane.b32.xlu0 %v682_v49, %s967_s7 }
 0x140   :  { %v1382_v45 = vpop.permute.xlu1 %370 }
 0x141   :  { %v1384_v44 = vpop.permute.xlu0 %372 }
 0x142   :  { %730 = vrot.lane.b32.xlu1 %v683_v54, %s967_s7 }
 0x143   :  { %504 = vrot.lane.b32.xlu0 %v1368_v41, %s966_s6 }
 0x144   :  { %v1390_v60 = vpop.permute.xlu1 %374 }
 0x145   :  { %v1392_v47 = vpop.permute.xlu0 %376 }
 0x146   :  { %506 = vrot.lane.b32.xlu1 %v1378_v32, %s966_s6 }
 0x148   :  { %v1396_v10 = vpop.permute.xlu1 %378 }
 0x149   :  { %v1398_v49 = vpop.permute.xlu0 %380 }
 0x14c   :  { %v1400_v39 = vpop.permute.xlu1 %382 }
 0x14d   :  { %v1402_v38 = vpop.permute.xlu0 %384 }
 0x150   :  { %v1404_v37 = vpop.permute.xlu1 %386 }
 0x151   :  { %v1406_v54 = vpop.permute.xlu0 %388 }
 0x152   :  { %1853 = vst [vmem:[#allocation50_spill] sm:$0xff] %v1406_v54 }
 0x154   :  { %v1408_v41 = vpop.permute.xlu1 %390 }
 0x155   :  { %1854 = vst [vmem:[#allocation51_spill] sm:$0xff] %v1408_v41  ;;  %v1410_v36 = vpop.permute.xlu0 %392 }
 0x156   :  { %1855 = vst [vmem:[#allocation52_spill] sm:$0xff] %v1410_v36 }
 0x158   :  { %v1412_v35 = vpop.permute.xlu1 %394 }
 0x159   :  { %1856 = vst [vmem:[#allocation53_spill] sm:$0xff] %v1412_v35  ;;  %v1414_v34 = vpop.permute.xlu0 %476 }
 0x15a   :  { %1857 = vst [vmem:[#allocation54_spill] sm:$0xff] %v1414_v34 }
 0x15c   :  { %v1416_v32 = vpop.permute.xlu1 %478 }
 0x15d   :  { %1858 = vst [vmem:[#allocation55_spill] sm:$0xff] %v1416_v32  ;;  %v1418_v31 = vpop.permute.xlu0 %480 }
 0x15e   :  { %1859 = vst [vmem:[#allocation56_spill] sm:$0xff] %v1418_v31 }
 0x160   :  { %v1420_v33 = vpop.permute.xlu1 %482 }
 0x161   :  { %1860 = vst [vmem:[#allocation57_spill] sm:$0xff] %v1420_v33  ;;  %v1422_v30 = vpop.permute.xlu0 %484 }
 0x162   :  { %1861 = vst [vmem:[#allocation58_spill] sm:$0xff] %v1422_v30 }
 0x164   :  { %v1424_v29 = vpop.permute.xlu1 %486 }
 0x165   :  { %1862 = vst [vmem:[#allocation59_spill] sm:$0xff] %v1424_v29  ;;  %v1426_v15 = vpop.permute.xlu0 %488 }
 0x166   :  { %1863 = vst [vmem:[#allocation60_spill] sm:$0xff] %v1426_v15 }
 0x168   :  { %v1428_v54 = vpop.permute.xlu1 %490 }
 0x169   :  { %1864 = vst [vmem:[#allocation61_spill] sm:$0xff] %v1428_v54  ;;  %v1430_v41 = vpop.permute.xlu0 %492 }
 0x16a   :  { %1865 = vst [vmem:[#allocation62_spill] sm:$0xff] %v1430_v41 }
 0x16c   :  { %v1432_v36 = vpop.permute.xlu1 %494 }
 0x16d   :  { %1866 = vst [vmem:[#allocation63_spill] sm:$0xff] %v1432_v36  ;;  %v1434_v35 = vpop.permute.xlu0 %496 }
 0x16e   :  { %1867 = vst [vmem:[#allocation64_spill] sm:$0xff] %v1434_v35  ;;  %v334_v35 = vsub.f32 %v1088_v56, %v1308_v6  ;;  %v414_v6 = vsub.f32 %v1164_v19, %v1374_v43  ;;  %v416_v19 = vsub.f32 %v1172_v21, %v1384_v44  ;;  %v420_v21 = vsub.f32 %v1188_v25, %v1398_v49  ;;  %v1881_v25 = vld [vmem:[#allocation18_spill] sm:$0xff] }
 0x16f   :  { %v423_v44 = vsub.f32 %v1202_v28, %v1404_v37  ;;  %v1884_v28 = vld [vmem:[#allocation51_spill] sm:$0xff] }
 0x170   :  { %v1436_v34 = vpop.permute.xlu1 %498  ;;  %v1885_v37 = vld [vmem:[#allocation19_spill] sm:$0xff] }
 0x171   :  { %1868 = vst [vmem:[#allocation65_spill] sm:$0xff] %v1436_v34  ;;  %v1438_v32 = vpop.permute.xlu0 %500  ;;  %v332_v34 = vsub.f32 %v1082_v55, %v1300_v61 }
 0x172   :  { %1869 = vst [vmem:[#allocation66_spill] sm:$0xff] %v1438_v32  ;;  %v333_v32 = vsub.f32 %v1090_v59, %v1306_v5 }
 0x174   :  { %v1440_v31 = vpop.permute.xlu1 %502 }
 0x175   :  { %1870 = vst [vmem:[#allocation67_spill] sm:$0xff] %v1440_v31  ;;  %v1442_v33 = vpop.permute.xlu0 %588  ;;  %v412_v31 = vsub.f32 %v1156_v17, %v1364_v40  ;;  %v337_v17 = vsub.f32 %v1108_v0, %v1322_v51  ;;  %v338_v40 = vsub.f32 %v1110_v3, %v1324_v52  ;;  %v342_v51 = vsub.f32 %v1130_v11, %v1340_v9 }
 0x176   :  { %v343_v52 = vsub.f32 %v1138_v12, %v1346_v50  ;;  %v430_v50 = vmul.f32 2.0, %v414_v6 }
 0x178   :  { %v1444_v30 = vpop.permute.xlu1 %590 }
 0x179   :  { %v1446_v29 = vpop.permute.xlu0 %592 }
 0x17a   :  { %1871 = vst [vmem:[#allocation68_spill] sm:$0xff] %v1446_v29  ;;  %v336_v29 = vsub.f32 %v1100_v63, %v1316_v48 }
 0x17c   :  { %v1448_v15 = vpop.permute.xlu1 %594 }
 0x17d   :  { %1872 = vst [vmem:[#allocation69_spill] sm:$0xff] %v1448_v15  ;;  %v1450_v54 = vpop.permute.xlu0 %596  ;;  %v335_v15 = vsub.f32 %v1098_v62, %v1314_v46  ;;  %v339_v46 = vsub.f32 %v1118_v4, %v1330_v57 }
 0x17e   :  { %1873 = vst [vmem:[#allocation70_spill] sm:$0xff] %v1450_v54 }
 0x180   :  { %v1452_v41 = vpop.permute.xlu1 %598 }
 0x181   :  { %1874 = vst [vmem:[#allocation71_spill] sm:$0xff] %v1452_v41  ;;  %v1454_v36 = vpop.permute.xlu0 %600  ;;  %v413_v41 = vsub.f32 %v1162_v18, %v1372_v42  ;;  %v340_v18 = vsub.f32 %v1120_v7, %v1332_v58  ;;  %v341_v42 = vsub.f32 %v1128_v8, %v1338_v2  ;;  %v417_v58 = vsub.f32 %v1178_v22, %v1390_v60 }
 0x182   :  { %1875 = vst [vmem:[#allocation72_spill] sm:$0xff] %v1454_v36  ;;  %v418_v2 = vsub.f32 %v1180_v23, %v1392_v47  ;;  %v421_v22 = vsub.f32 %v1194_v26, %v1400_v39  ;;  %v345_v23 = vsub.f32 %v1146_v14, %v1354_v1  ;;  %v1891_v47 = vld [vmem:[#allocation23_spill] sm:$0xff] }
 0x183   :  { %v429_v43 = vmul.f32 2.0, %v413_v41  ;;  %v433_v26 = vmul.f32 2.0, %v417_v58 }
 0x184   :  { %v1468_v54 = vpop.permute.xlu1 %602  ;;  %v434_v39 = vmul.f32 2.0, %v418_v2  ;;  %v437_v14 = vmul.f32 2.0, %v421_v22  ;;  %v1888_v2 = vld [vmem:[#allocation52_spill] sm:$0xff] }
 0x185   :  { %1876 = vst [vmem:[#allocation73_spill] sm:$0xff] %v1468_v54  ;;  %v1470_v36 = vpop.permute.xlu0 %604  ;;  %v428_v54 = vmul.f32 2.0, %v412_v31  ;;  %v344_v31 = vsub.f32 %v1140_v13, %v1348_v53  ;;  %v1880_v53 = vld [vmem:[#allocation50_spill] sm:$0xff]  ;;  %v445_v13 = vadd.f32 %v429_v43, %v333_v32  ;;  %v1889_v43 = vld [vmem:[#allocation20_spill] sm:$0xff] }
 0x186   :  { %1877 = vst [vmem:[#allocation74_spill] sm:$0xff] %v1470_v36  ;;  %v415_v36 = vsub.f32 %v1170_v20, %v1382_v45  ;;  %v419_v20 = vsub.f32 %v1186_v24, %v1396_v10  ;;  %v422_v24 = vsub.f32 %v1196_v27, %v1402_v38  ;;  %v432_v10 = vmul.f32 2.0, %v416_v19  ;;  %v1886_v19 = vld [vmem:[#allocation54_spill] sm:$0xff]  ;;  %v1892_v22 = vld [vmem:[#allocation56_spill] sm:$0xff] }
 0x187   :  { %v444_v6 = vadd.f32 %v428_v54, %v332_v34  ;;  %v424_v49 = vsub.f32 %v1881_v25, %v1880_v53  ;;  %v446_v27 = vadd.f32 %v430_v50, %v334_v35  ;;  %v436_v38 = vmul.f32 2.0, %v420_v21  ;;  %v1890_v25 = vld [vmem:[#allocation55_spill] sm:$0xff] }
 0x188   :  { %v1500_v45 = vpop.permute.xlu1 %606  ;;  %v431_v41 = vmul.f32 2.0, %v415_v36  ;;  %v435_v12 = vmul.f32 2.0, %v419_v20  ;;  %v438_v34 = vmul.f32 2.0, %v422_v24  ;;  %v439_v54 = vmul.f32 2.0, %v423_v44 }
 0x189   :  { %v1502_v9 = vpop.permute.xlu0 %608  ;;  %v524_v53 = vsub.f32 %v1887_v16, %v1886_v19  ;;  %v448_v32 = vadd.f32 %v432_v10, %v336_v29  ;;  %v440_v58 = vmul.f32 2.0, %v424_v49  ;;  %v426_v20 = vsub.f32 %v1889_v43, %v1888_v2  ;;  %v1896_v10 = vld [vmem:[#allocation57_spill] sm:$0xff] }
 0x18a   :  { %1878 = vst [vmem:[#allocation75_spill] sm:$0xff] %v1502_v9  ;;  %v425_v9 = vsub.f32 %v1885_v37, %v1884_v28  ;;  %v447_v60 = vadd.f32 %v431_v41, %v335_v15  ;;  %v449_v35 = vadd.f32 %v433_v26, %v337_v17  ;;  %v450_v50 = vadd.f32 %v434_v39, %v338_v40  ;;  %v1897_v49 = vld [vmem:[#allocation25_spill] sm:$0xff] }
 0x18b   :  { %v451_v21 = vadd.f32 %v435_v12, %v339_v46  ;;  %v452_v24 = vadd.f32 %v436_v38, %v340_v18  ;;  %v1538_v44 = vadd.f32 %v437_v14, %v341_v42  ;;  %v527_v37 = vsub.f32 %v1897_v49, %v1896_v10  ;;  %v1899_v12 = vld [vmem:[#allocation58_spill] sm:$0xff]  ;;  %v1903_v18 = vld [vmem:[#allocation59_spill] sm:$0xff]  ;;  %v1906_v38 = vld [vmem:[#allocation28_spill] sm:$0xff] }
 0x18c   :  { %v1520_v1 = vpop.permute.xlu1 %610  ;;  %v441_v29 = vmul.f32 2.0, %v425_v9  ;;  %v1542_v2 = vadd.f32 %v438_v34, %v342_v51  ;;  %v1544_v43 = vadd.f32 %v439_v54, %v343_v52  ;;  %v540_v17 = vadd.f32 %v524_v53, %v444_v6  ;;  %v1900_v46 = vld [vmem:[#allocation26_spill] sm:$0xff]  ;;  %v1904_v51 = vld [vmem:[#allocation27_spill] sm:$0xff]  ;;  %v1905_v52 = vld [vmem:[#allocation60_spill] sm:$0xff] }
 0x18d   :  { %1882 = vst [vmem:[#allocation50_spill] sm:$0xff] %v1520_v1  ;;  %v1522_v36 = vpop.permute.xlu0 %612  ;;  %v1893_v1 = vld [vmem:[#allocation24_spill] sm:$0xff]  ;;  %v528_v40 = vsub.f32 %v1900_v46, %v1899_v12  ;;  %v1548_v26 = vadd.f32 %v440_v58, %v344_v31  ;;  %v1550_v39 = vmul.f32 2.0, %v426_v20  ;;  %v636_v14 = vadd.f32 %v1442_v33, %v1082_v55  ;;  %v1907_v34 = vld [vmem:[#allocation61_spill] sm:$0xff] }
 0x18e   :  { %1883 = vst [vmem:[#allocation18_spill] sm:$0xff] %v1522_v36  ;;  %v525_v36 = vsub.f32 %v1891_v47, %v1890_v25  ;;  %v526_v28 = vsub.f32 %v1893_v1, %v1892_v22  ;;  %1898 = vst [vmem:[#allocation54_spill] sm:$0xff] %v1544_v43  ;;  %v529_v42 = vsub.f32 %v1904_v51, %v1903_v18  ;;  %v1908_v54 = vld [vmem:[#allocation29_spill] sm:$0xff] }
 0x18f   :  { %1901 = vst [vmem:[#allocation22_spill] sm:$0xff] %v1548_v26  ;;  %1902 = vst [vmem:[#allocation52_spill] sm:$0xff] %v1550_v39  ;;  %v530_v6 = vsub.f32 %v1906_v38, %v1905_v52  ;;  %v531_v53 = vsub.f32 %v1908_v54, %v1907_v34  ;;  %v1911_v20 = vld [vmem:[#allocation21_spill] sm:$0xff]  ;;  %v1570_v33 = vadd.f32 %v527_v37, %v447_v60  ;;  %v1912_v26 = vld [vmem:[#allocation62_spill] sm:$0xff] }
 0x190   :  { %v1534_v15 = vpop.permute.xlu1 %614  ;;  %v1556_v9 = vadd.f32 %v526_v28, %v446_v27  ;;  %v796_v28 = vand.u32 2147483647, %v540_v17  ;;  %v1573_v39 = vadd.f32 %v528_v40, %v448_v32  ;;  %v1585_v37 = vadd.f32 %v529_v42, %v449_v35 }
 0x191   :  { %1894 = vst [vmem:[#allocation51_spill] sm:$0xff] %v1534_v15  ;;  %v1536_v41 = vpop.permute.xlu0 %616  ;;  %v1913_v15 = vld [vmem:[#allocation30_spill] sm:$0xff]  ;;  %v1587_v32 = vadd.f32 %v530_v6, %v450_v50  ;;  %v1589_v17 = vadd.f32 %v531_v53, %v451_v21  ;;  %v1915_v50 = vld [vmem:[#allocation69_spill] sm:$0xff]  ;;  %v1916_v21 = vld [vmem:[#allocation36_spill] sm:$0xff] }
 0x192   :  { %1895 = vst [vmem:[#allocation19_spill] sm:$0xff] %v1536_v41  ;;  %v1552_v41 = vadd.f32 %v525_v36, %v445_v13  ;;  %v1566_v13 = vadd.f32 %v441_v29, %v345_v23  ;;  %v1910_v36 = vld [vmem:[#allocation53_spill] sm:$0xff]  ;;  %v532_v43 = vsub.f32 %v1913_v15, %v1912_v26  ;;  %v652_v23 = vadd.f32 %v636_v14, %v1300_v61  ;;  %v1914_v29 = vld [vmem:[#allocation68_spill] sm:$0xff] }
 0x193   :  { %v638_v55 = vadd.f32 %v1914_v29, %v1088_v56  ;;  %v800_v56 = vand.u32 2147483647, %v1573_v39  ;;  %v639_v14 = vadd.f32 %v1915_v50, %v1098_v62  ;;  %v803_v39 = vand.u32 2147483647, %v1589_v17 }
 0x194   :  { %v1564_v31 = vpop.permute.xlu1 %618  ;;  %v797_v11 = vand.u32 2147483647, %v1552_v41 }
 0x195   :  { %1909 = vst [vmem:[#allocation20_spill] sm:$0xff] %v1564_v31  ;;  %v701_v58 = vpop.permute.xlu0 %700  ;;  %v637_v31 = vadd.f32 %v1444_v30, %v1090_v59  ;;  %v799_v59 = vand.u32 2147483647, %v1570_v33 }
 0x196   :  { %v748_v27 = vadd.f32 %v701_v58, %v1887_v16  ;;  %v798_v16 = vand.u32 2147483647, %v1556_v9  ;;  %v654_v9 = vadd.f32 %v638_v55, %v1916_v21 }
 0x197   :  { %v653_v35 = vadd.f32 %v637_v31, %v1306_v5 }
 0x198   :  { %v764_v60 = vadd.f32 %v748_v27, %v1886_v19  ;;  %v703_v40 = vpop.permute.xlu1 %702  ;;  %v1595_v19 = vadd.f32 %v532_v43, %v452_v24  ;;  %v1917_v24 = vld [vmem:[#allocation70_spill] sm:$0xff] }
 0x199   :  { %v705_v58 = vpop.permute.xlu0 %704  ;;  %v749_v61 = vadd.f32 %v703_v40, %v1891_v47  ;;  %v801_v47 = vand.u32 2147483647, %v1585_v37  ;;  %v640_v43 = vadd.f32 %v1917_v24, %v1100_v63 }
 0x19a   :  { %v780_v30 = vsub.f32 %v652_v23, %v764_v60  ;;  %v750_v41 = vadd.f32 %v705_v58, %v1893_v1  ;;  %v802_v1 = vand.u32 2147483647, %v1587_v32  ;;  %v1918_v23 = vld [vmem:[#allocation63_spill] sm:$0xff]  ;;  %v1920_v60 = vld [vmem:[#allocation37_spill] sm:$0xff] }
 0x19b   :  { %v765_v6 = vadd.f32 %v749_v61, %v1890_v25  ;;  %v804_v25 = vand.u32 2147483647, %v1595_v19  ;;  %v655_v40 = vadd.f32 %v639_v14, %v1920_v60  ;;  %v656_v21 = vadd.f32 %v640_v43, %v1316_v48  ;;  %v1926_v43 = vld [vmem:[#allocation38_spill] sm:$0xff] }
 0x19c   :  { %v812_v42 = vand.u32 2147483647, %v780_v30  ;;  %v766_v53 = vadd.f32 %v750_v41, %v1892_v22  ;;  %v707_v5 = vpop.permute.xlu1 %706  ;;  %v1919_v22 = vld [vmem:[#allocation31_spill] sm:$0xff] }
 0x19d   :  { %v709_v31 = vpop.permute.xlu0 %708  ;;  %v781_v62 = vsub.f32 %v653_v35, %v765_v6  ;;  %v751_v55 = vadd.f32 %v707_v5, %v1897_v49  ;;  %v533_v29 = vsub.f32 %v1919_v22, %v1918_v23  ;;  %v1921_v30 = vld [vmem:[#allocation71_spill] sm:$0xff]  ;;  %v1922_v35 = vld [vmem:[#allocation64_spill] sm:$0xff] }
 0x19e   :  { %v828_v33 = vadd.f32 %v812_v42, %v796_v28  ;;  %v782_v27 = vsub.f32 %v654_v9, %v766_v53  ;;  %v752_v58 = vadd.f32 %v709_v31, %v1900_v46  ;;  %v641_v61 = vadd.f32 %v1921_v30, %v1108_v0  ;;  %v1923_v49 = vld [vmem:[#allocation32_spill] sm:$0xff] }
 0x19f   :  { %v813_v63 = vand.u32 2147483647, %v781_v62  ;;  %v767_v41 = vadd.f32 %v751_v55, %v1896_v10  ;;  %v534_v50 = vsub.f32 %v1923_v49, %v1922_v35  ;;  %v1924_v9 = vld [vmem:[#allocation72_spill] sm:$0xff]  ;;  %v1626_v31 = vadd.f32 %v533_v29, %v1538_v44  ;;  %v1925_v10 = vld [vmem:[#allocation73_spill] sm:$0xff] }
 0x1a0   :  { %845 = vst.msk [vmem:[#allocation8] sm:$0xff] %vm844_vm4, %v828_v33  ;;  %v814_v28 = vand.u32 2147483647, %v782_v27  ;;  %v642_v42 = vadd.f32 %v1924_v9, %v1110_v3  ;;  %v768_v14 = vadd.f32 %v752_v58, %v1899_v12  ;;  %v711_v46 = vpop.permute.xlu1 %710  ;;  %v643_v33 = vadd.f32 %v1925_v10, %v1118_v4  ;;  %v1927_v12 = vld [vmem:[#allocation74_spill] sm:$0xff]  ;;  %v1935_v10 = vld [vmem:[#allocation13_spill] sm:$0xff] }
 0x1a1   :  { %v713_v6 = vpop.permute.xlu0 %712  ;;  %v829_v53 = vadd.f32 %v813_v63, %v797_v11  ;;  %v783_v24 = vsub.f32 %v655_v40, %v767_v41  ;;  %v753_v5 = vadd.f32 %v711_v46, %v1904_v51  ;;  %v657_v3 = vadd.f32 %v641_v61, %v1926_v43  ;;  %v1938_v43 = vld [vmem:[#allocation34_spill] sm:$0xff] }
 0x1a2   :  { %v830_v0 = vadd.f32 %v814_v28, %v798_v16  ;;  %v784_v62 = vsub.f32 %v656_v21, %v768_v14  ;;  %v754_v48 = vadd.f32 %v713_v6, %v1906_v38  ;;  %v644_v27 = vadd.f32 %v1927_v12, %v1120_v7  ;;  %v1928_v16 = vld [vmem:[#allocation39_spill] sm:$0xff]  ;;  %v1929_v28 = vld [vmem:[#allocation40_spill] sm:$0xff]  ;;  %v1933_v6 = vld [vmem:[#allocation33_spill] sm:$0xff] }
 0x1a3   :  { %846 = vst.msk [vmem:[#allocation8 + $0x8] sm:$0xff] %vm844_vm4, %v829_v53  ;;  %v815_v11 = vand.u32 2147483647, %v783_v24  ;;  %v769_v51 = vadd.f32 %v753_v5, %v1903_v18  ;;  %v1638_v44 = vadd.f32 %v534_v50, %v1542_v2  ;;  %v658_v4 = vadd.f32 %v642_v42, %v1928_v16  ;;  %v1930_v21 = vld [vmem:[#allocation12_spill] sm:$0xff]  ;;  %v1939_v12 = vld [vmem:[#allocation42_spill] sm:$0xff] }
 0x1a4   :  { %847 = vst.msk [vmem:[#allocation8 + $0x10] sm:$0xff] %vm844_vm4, %v830_v0  ;;  %v816_v55 = vand.u32 2147483647, %v784_v62  ;;  %v770_v38 = vadd.f32 %v754_v48, %v1905_v52  ;;  %v715_v29 = vpop.permute.xlu1 %714  ;;  %v659_v61 = vadd.f32 %v643_v33, %v1330_v57  ;;  %v645_v18 = vadd.f32 %v1500_v45, %v1128_v8  ;;  %v1931_v57 = vld [vmem:[#allocation75_spill] sm:$0xff]  ;;  %v1934_v0 = vld [vmem:[#allocation41_spill] sm:$0xff]  ;;  %v1936_v33 = vld [vmem:[#allocation50_spill] sm:$0xff] }
 0x1a5   :  { %v717_v60 = vpop.permute.xlu0 %716  ;;  %v831_v40 = vadd.f32 %v815_v11, %v799_v59  ;;  %v785_v58 = vsub.f32 %v657_v3, %v769_v51  ;;  %v755_v7 = vadd.f32 %v715_v29, %v1908_v54  ;;  %v660_v41 = vadd.f32 %v644_v27, %v1929_v28  ;;  %v1940_v11 = vld [vmem:[#allocation14_spill] sm:$0xff]  ;;  %v1949_v28 = vld [vmem:[#allocation44_spill] sm:$0xff] }
 0x1a6   :  { %v756_v30 = vadd.f32 %v717_v60, %v1913_v15  ;;  %v832_v2 = vadd.f32 %v816_v55, %v800_v56  ;;  %v786_v63 = vsub.f32 %v658_v4, %v770_v38  ;;  %v805_v54 = vand.u32 2147483647, %v1626_v31  ;;  %v1941_v51 = vld [vmem:[#allocation18_spill] sm:$0xff]  ;;  %v1943_v60 = vld [vmem:[#allocation67_spill] sm:$0xff] }
 0x1a7   :  { %848 = vst.msk [vmem:[#allocation8 + $0x18] sm:$0xff] %vm844_vm4, %v831_v40  ;;  %v817_v52 = vand.u32 2147483647, %v785_v58  ;;  %v771_v50 = vadd.f32 %v755_v7, %v1907_v34  ;;  %v806_v15 = vand.u32 2147483647, %v1638_v44  ;;  %v646_v9 = vadd.f32 %v1931_v57, %v1930_v21  ;;  %v1942_v38 = vld [vmem:[#allocation54_spill] sm:$0xff] }
 0x1a8   :  { %v772_v59 = vadd.f32 %v756_v30, %v1912_v26  ;;  %849 = vst.msk [vmem:[#allocation8 + $0x20] sm:$0xff] %vm844_vm4, %v832_v2  ;;  %v818_v8 = vand.u32 2147483647, %v786_v63  ;;  %v719_v45 = vpop.permute.xlu1 %718  ;;  %v1932_v26 = vld [vmem:[#allocation65_spill] sm:$0xff]  ;;  %v661_v24 = vadd.f32 %v645_v18, %v1934_v0  ;;  %v647_v62 = vadd.f32 %v1936_v33, %v1935_v10  ;;  %v1944_v40 = vld [vmem:[#allocation35_spill] sm:$0xff] }
 0x1a9   :  { %v721_v56 = vpop.permute.xlu0 %720  ;;  %v833_v42 = vadd.f32 %v817_v52, %v801_v47  ;;  %v787_v14 = vsub.f32 %v659_v61, %v771_v50  ;;  %v757_v34 = vadd.f32 %v719_v45, %v1919_v22  ;;  %v535_v53 = vsub.f32 %v1933_v6, %v1932_v26  ;;  %v1937_v22 = vld [vmem:[#allocation66_spill] sm:$0xff]  ;;  %v1946_v18 = vld [vmem:[#allocation15_spill] sm:$0xff]  ;;  %v1953_v0 = vld [vmem:[#allocation45_spill] sm:$0xff] }
 0x1aa   :  { %v788_v46 = vsub.f32 %v660_v41, %v772_v59  ;;  %v834_v5 = vadd.f32 %v818_v8, %v802_v1  ;;  %v758_v31 = vadd.f32 %v721_v56, %v1923_v49  ;;  %v536_v3 = vsub.f32 %v1938_v43, %v1937_v22  ;;  %v1947_v2 = vld [vmem:[#allocation51_spill] sm:$0xff] }
 0x1ab   :  { %850 = vst.msk [vmem:[#allocation8 + $0x28] sm:$0xff] %vm844_vm4, %v833_v42  ;;  %v819_v37 = vand.u32 2147483647, %v787_v14  ;;  %v773_v48 = vadd.f32 %v757_v34, %v1918_v23  ;;  %v662_v27 = vadd.f32 %v646_v9, %v1939_v12  ;;  %v648_v32 = vadd.f32 %v1941_v51, %v1940_v11  ;;  %v1951_v14 = vld [vmem:[#allocation16_spill] sm:$0xff]  ;;  %v1960_v11 = vld [vmem:[#allocation47_spill] sm:$0xff] }
 0x1ac   :  { %v820_v47 = vand.u32 2147483647, %v788_v46  ;;  %851 = vst.msk [vmem:[#allocation8 + $0x30] sm:$0xff] %vm844_vm4, %v834_v5  ;;  %v774_v1 = vadd.f32 %v758_v31, %v1922_v35  ;;  %v723_v49 = vpop.permute.xlu1 %722  ;;  %v551_v29 = vadd.f32 %v535_v53, %v1942_v38  ;;  %v537_v58 = vsub.f32 %v1944_v40, %v1943_v60  ;;  %v1945_v35 = vld [vmem:[#allocation43_spill] sm:$0xff]  ;;  %v1955_v31 = vld [vmem:[#allocation20_spill] sm:$0xff] }
 0x1ad   :  { %v725_v44 = vpop.permute.xlu0 %724  ;;  %v835_v16 = vadd.f32 %v819_v37, %v803_v39  ;;  %v789_v4 = vsub.f32 %v661_v24, %v773_v48  ;;  %v759_v55 = vadd.f32 %v723_v49, %v1933_v6  ;;  %v663_v61 = vadd.f32 %v647_v62, %v1945_v35  ;;  %v1952_v46 = vld [vmem:[#allocation19_spill] sm:$0xff]  ;;  %v1956_v62 = vld [vmem:[#allocation48_spill] sm:$0xff] }
 0x1ae   :  { %v836_v23 = vadd.f32 %v820_v47, %v804_v25  ;;  %v790_v7 = vsub.f32 %v662_v27, %v774_v1  ;;  %v760_v30 = vadd.f32 %v725_v44, %v1938_v43  ;;  %v649_v17 = vadd.f32 %v1947_v2, %v1946_v18  ;;  %v1948_v25 = vld [vmem:[#allocation22_spill] sm:$0xff] }
 0x1af   :  { %852 = vst.msk [vmem:[#allocation8 + $0x38] sm:$0xff] %vm844_vm4, %v835_v16  ;;  %v821_v19 = vand.u32 2147483647, %v789_v4  ;;  %v775_v39 = vadd.f32 %v759_v55, %v1932_v26  ;;  %v552_v63 = vadd.f32 %v536_v3, %v1948_v25  ;;  %v664_v41 = vadd.f32 %v648_v32, %v1949_v28 }
 0x1b0   :  { %853 = vst.msk [vmem:[#allocation8 + $0x40] sm:$0xff] %vm844_vm4, %v836_v23  ;;  %v822_v52 = vand.u32 2147483647, %v790_v7  ;;  %v776_v50 = vadd.f32 %v760_v30, %v1937_v22  ;;  %v727_v59 = vpop.permute.xlu1 %726  ;;  %v1950_v57 = vsub.f32 %v1911_v20, %v1910_v36  ;;  %v807_v42 = vand.u32 2147483647, %v551_v29  ;;  %v1959_v22 = vld [vmem:[#allocation52_spill] sm:$0xff] }
 0x1b1   :  { %v729_v21 = vpop.permute.xlu0 %728  ;;  %v837_v8 = vadd.f32 %v821_v19, %v805_v54  ;;  %v791_v45 = vsub.f32 %v663_v61, %v775_v39  ;;  %v761_v56 = vadd.f32 %v727_v59, %v1944_v40  ;;  %v650_v34 = vadd.f32 %v1952_v46, %v1951_v14  ;;  %v1954_v54 = vld [vmem:[#allocation17_spill] sm:$0xff] }
 0x1b2   :  { %v443_v9 = vmul.f32 2.0, %v1950_v57  ;;  %v838_v26 = vadd.f32 %v822_v52, %v806_v15  ;;  %v792_v6 = vsub.f32 %v664_v41, %v776_v50  ;;  %v553_v53 = vadd.f32 %v537_v58, %v1566_v13  ;;  %v1957_v13 = vld [vmem:[#allocation46_spill] sm:$0xff]  ;;  %v1961_v23 = vld [vmem:[#allocation49_spill] sm:$0xff] }
 0x1b3   :  { %v665_v24 = vadd.f32 %v649_v17, %v1953_v0  ;;  %854 = vst.msk [vmem:[#allocation8 + $0x48] sm:$0xff] %vm844_vm4, %v837_v8  ;;  %v823_v5 = vand.u32 2147483647, %v791_v45  ;;  %v777_v36 = vadd.f32 %v761_v56, %v1943_v60  ;;  %v808_v20 = vand.u32 2147483647, %v552_v63 }
 0x1b4   :  { %v651_v10 = vadd.f32 %v1955_v31, %v1954_v54  ;;  %855 = vst.msk [vmem:[#allocation8 + $0x50] sm:$0xff] %vm844_vm4, %v838_v26  ;;  %v824_v33 = vand.u32 2147483647, %v792_v6  ;;  %v762_v37 = vadd.f32 %v729_v21, %v1956_v62  ;;  %v731_v15 = vpop.permute.xlu1 %730  ;;  %v1958_v48 = vsub.f32 %v1951_v14, %v1957_v13 }
 0x1b5   :  { %v505_v47 = vpop.permute.xlu0 %504  ;;  %v839_v3 = vadd.f32 %v823_v5, %v807_v42  ;;  %v793_v12 = vsub.f32 %v665_v24, %v777_v36  ;;  %v347_v51 = vsub.f32 %v1954_v54, %v1960_v11  ;;  %v666_v32 = vadd.f32 %v650_v34, %v1957_v13 }
 0x1b6   :  { %v458_v43 = vadd.f32 %v1959_v22, %v1958_v48  ;;  %v538_v27 = vsub.f32 %v1956_v62, %v505_v47  ;;  %v840_v1 = vadd.f32 %v824_v33, %v808_v20  ;;  %v778_v49 = vadd.f32 %v762_v37, %v505_v47 }
 0x1b7   :  { %v809_v44 = vand.u32 2147483647, %v553_v53  ;;  %856 = vst.msk [vmem:[#allocation8 + $0x58] sm:$0xff] %vm844_vm4, %v839_v3  ;;  %v825_v16 = vand.u32 2147483647, %v793_v12  ;;  %v763_v4 = vadd.f32 %v731_v15, %v1961_v23  ;;  %v459_v38 = vadd.f32 %v443_v9, %v347_v51 }
 0x1b8   :  { %v554_v55 = vadd.f32 %v538_v27, %v458_v43  ;;  %v667_v29 = vadd.f32 %v651_v10, %v1960_v11  ;;  %857 = vst.msk [vmem:[#allocation8 + $0x60] sm:$0xff] %vm844_vm4, %v840_v1  ;;  %v794_v60 = vsub.f32 %v666_v32, %v778_v49  ;;  %v507_v40 = vpop.permute.xlu1 %506 }
 0x1b9   :  { %v841_v58 = vadd.f32 %v825_v16, %v809_v44  ;;  %v539_v30 = vsub.f32 %v1961_v23, %v507_v40  ;;  %v779_v35 = vadd.f32 %v763_v4, %v507_v40 }
 0x1ba   :  { %v810_v7 = vand.u32 2147483647, %v554_v55  ;;  %v826_v61 = vand.u32 2147483647, %v794_v60 }
 0x1bb   :  { %858 = vst.msk [vmem:[#allocation8 + $0x68] sm:$0xff] %vm844_vm4, %v841_v58  ;;  %v555_v18 = vadd.f32 %v539_v30, %v459_v38  ;;  %v795_v2 = vsub.f32 %v667_v29, %v779_v35 }
 0x1bc   :  { %v842_v17 = vadd.f32 %v826_v61, %v810_v7 }
 0x1bd   :  { %v811_v19 = vand.u32 2147483647, %v555_v18  ;;  %v827_v39 = vand.u32 2147483647, %v795_v2 }
 0x1be   :  { %859 = vst.msk [vmem:[#allocation8 + $0x70] sm:$0xff] %vm844_vm4, %v842_v17 }
 0x1bf   :  { %v843_v25 = vadd.f32 %v827_v39, %v811_v19 }
 0x1c1   :  { %860 = vst.msk [vmem:[#allocation8 + $0x78] sm:$0xff] %vm844_vm4, %v843_v25 }
 0x1c2   :  { %943 = shalt.err (!%p940_p6)
}
 0x1c3   :  { %s944_s13 = scalar_lea.hbm %s1741_s2, 2048 }
 0x1c4   :  { %p945_p7 = scmp.ne.s32.totalorder %s1741_s2, %s944_s13  ;;  %p948_p8 = scmp.lt.u32.totalorder %s944_s13, %s1741_s2 }
 0x1c6   :  { %p950_p9 = pnand %p948_p8, %p945_p7 }
 0x1c8   :  { %953 = shalt.err (!%p950_p9)
}
 0x1c9   :  { %872 = dma.vmem_to_hbm [thread:$0]  %s867_s9, 2048, %s1741_s2, [#allocation5], %s961_s19, %s961_s19, %s962_s20  }
 0x1ca   :  { %958 = dma.done.wait [#allocation5], 2048  }
 0x1cb   :  { %959 = vsyncadd [#allocation5], 4294965248 }
 0x1cc   :  { %876 = vsyncpa [#allocation4], 1 }
 0x1cd   :  { %877 = vsyncpa [#allocation7], 1 }
 0x1ce   :  { %878 = vsyncpa [#allocation5], 1 }

</bundles_post_ra>
